<compile_context>
chip_gen: v5e
topology: v5e:2x2
jax: 0.10.0
libtpu: 0.0.40
codegen_flags: <defaults>
</compile_context>

<pallas_src>
import functools
import math

import jax
import jax.numpy as jnp
from jax.experimental import pallas as pl
from jax.experimental.pallas import tpu as pltpu


VMEM_LIMIT_BYTES = 32 * 1024 * 1024  # explicit scoped-VMEM cap (safe on v5e/v6e/v7x)


def _round_up(x, m):
    return ((x + m - 1) // m) * m


# ----------------------------------------------------------------------------
# Kernel 1: tiled "X @ W + b" (input projection / output head).
# ----------------------------------------------------------------------------
def _matmul_bias_kernel(x_ref, w_ref, b_ref, o_ref, acc_ref):
    @pl.when(pl.program_id(2) == 0)
    def _():
        # Initialize the accumulator with the (sublane-broadcast) bias row.
        acc_ref[...] = jnp.broadcast_to(b_ref[...], acc_ref.shape)

    acc_ref[...] += jnp.dot(x_ref[...], w_ref[...],
                            preferred_element_type=jnp.float32)

    @pl.when(pl.program_id(2) == pl.num_programs(2) - 1)
    def _():
        o_ref[...] = acc_ref[...]


def matmul_bias_pallas(x2, w, b, *, tm_max=256, tn_max=512, tk_max=512):
    """x2: (M, K), w: (K, N), b: (N,) -> (M, N) f32, tiled + pipelined."""
    M, K = x2.shape
    N = w.shape[1]

    tm = min(tm_max, _round_up(M, 8))
    Mp = _round_up(M, tm)
    Np = _round_up(N, 128)
    tn = Np if Np <= tn_max else tn_max
    Np = _round_up(Np, tn)
    Kp = _round_up(K, 8)
    tk = Kp if Kp <= tk_max else tk_max
    Kp = _round_up(Kp, tk)

    if (Mp, Kp) != (M, K):
        x2 = jnp.pad(x2, ((0, Mp - M), (0, Kp - K)))
    if (Kp, Np) != (K, N):
        w = jnp.pad(w, ((0, Kp - K), (0, Np - N)))
    b2 = (b if Np == N else jnp.pad(b, (0, Np - N))).reshape(1, Np)

    grid_spec = pltpu.PrefetchScalarGridSpec(
        num_scalar_prefetch=0,
        grid=(Mp // tm, Np // tn, Kp // tk),
        in_specs=[
            pl.BlockSpec((tm, tk), lambda i, j, k: (i, k)),
            pl.BlockSpec((tk, tn), lambda i, j, k: (k, j)),
            pl.BlockSpec((1, tn), lambda i, j, k: (0, j)),
        ],
        out_specs=pl.BlockSpec((tm, tn), lambda i, j, k: (i, j)),
        scratch_shapes=[pltpu.VMEM((tm, tn), jnp.float32)],
    )
    out = pl.pallas_call(
        _matmul_bias_kernel,
        out_shape=jax.ShapeDtypeStruct((Mp, Np), jnp.float32),
        grid_spec=grid_spec,
        compiler_params=pltpu.CompilerParams(
            dimension_semantics=("parallel", "parallel", "arbitrary"),
            vmem_limit_bytes=VMEM_LIMIT_BYTES),
    )(x2, w, b2)
    return out[:M, :N]


# ----------------------------------------------------------------------------
# Kernel 2: bidirectional LSTM recurrence (both directions fused in one loop).
# Input projection (x @ W_ih + b) is precomputed; kernel does only h @ W_hh.
# Gate order in xp / W_hh is (i, f, o, g).
# ----------------------------------------------------------------------------
def _bilstm_recurrence_kernel(xp_ref, whh_ref, out_ref, *, T, B, H, D):
    """xp_ref : (T, B, D*4H)  precomputed x @ W_ih + (b_ih + b_hh), gates (i,f,o,g)
       whh_ref: (D, H, 4H)    gate order (i, f, o, g)
       out_ref: (D, T, B, H)  per-direction slabs -> lane-dense stores
    """
    G = 4 * H
    # Hoisted: W_hh loaded once per direction, reused every step.
    whh = [whh_ref[d] for d in range(D)]

    def cell(pre, c):
        # (i, f, o | g): one contiguous sigmoid block, one tanh block.
        sig = jax.nn.sigmoid(pre[:, :3 * H])
        g_g = jnp.tanh(pre[:, 3 * H:])
        i_g = sig[:, :H]
        f_g = sig[:, H:2 * H]
        o_g = sig[:, 2 * H:3 * H]
        c_new = f_g * c + i_g * g_g
        h_new = o_g * jnp.tanh(c_new)
        return h_new, c_new

    def step(i, carry):
        # Forward step i and backward step i are independent: interleave them
        # so the two tiny matmuls pipeline through the MXU and EUP/VPU work
        # overlaps across directions.
        hs, cs = carry
        new_h, new_c = [], []
        for d in range(D):
            t = i if d == 0 else T - 1 - i
            pre = xp_ref[t, :, d * G:(d + 1) * G] + jnp.dot(
                hs[d], whh[d], preferred_element_type=jnp.float32)   # (B, 4H)
            h_new, c_new = cell(pre, cs[d])
            out_ref[d, t] = h_new       # full-last-dim (lane-dense) store
            new_h.append(h_new)
            new_c.append(c_new)
        return tuple(new_h), tuple(new_c)

    zeros = jnp.zeros((B, H), jnp.float32)
    carry = (tuple(zeros for _ in range(D)), tuple(zeros for _ in range(D)))
    if T <= 64:
        # Fully unrolled for short static T: gives the LLO scheduler full
        # visibility to interleave both directions' work across time steps.
        for i in range(T):
            carry = step(i, carry)
    else:
        # TODO(synk): for long T, time-block xp/out via pltpu.emit_pipeline so
        # only a window lives in VMEM (required on v7x's 64 MiB at prod sizes).
        jax.lax.fori_loop(0, T, step, carry)


def bilstm_layer_pallas(xp, whh_stack):
    """xp: (T, B, D*4H), whh_stack: (D, H, 4H) -> (D, T, B, H)."""
    T, B, _ = xp.shape
    D, H, _ = whh_stack.shape
    kernel = functools.partial(_bilstm_recurrence_kernel, T=T, B=B, H=H, D=D)
    return pl.pallas_call(
        kernel,
        out_shape=jax.ShapeDtypeStruct((D, T, B, H), jnp.float32),
        compiler_params=pltpu.CompilerParams(
            vmem_limit_bytes=VMEM_LIMIT_BYTES),
    )(xp, whh_stack)


# ----------------------------------------------------------------------------
# Kernel 3: log_softmax over the batch axis (dim=1 of (T, B, V)), as in the
# original PyTorch code (likely a modeling bug; reproduced faithfully, which
# is why it is NOT fused into the head matmul epilogue).
# ----------------------------------------------------------------------------
def _logsoftmax_batch_kernel(x_ref, o_ref):
    x = x_ref[...]                              # (tt, B, V)
    m = jnp.max(x, axis=1, keepdims=True)
    z = x - m
    lse = jnp.log(jnp.sum(jnp.exp(z), axis=1, keepdims=True))
    o_ref[...] = z - lse


def logsoftmax_batch_pallas(x, *, tt_max=128):
    T, B, V = x.shape
    tt = min(tt_max, T)
    Tp = _round_up(T, tt)
    if Tp != T:
        x = jnp.pad(x, ((0, Tp - T), (0, 0), (0, 0)))
    out = pl.pallas_call(
        _logsoftmax_batch_kernel,
        grid=(Tp // tt,),
        in_specs=[pl.BlockSpec((tt, B, V), lambda i: (i, 0, 0))],
        out_specs=pl.BlockSpec((tt, B, V), lambda i: (i, 0, 0)),
        out_shape=jax.ShapeDtypeStruct((Tp, B, V), jnp.float32),
        compiler_params=pltpu.CompilerParams(
            dimension_semantics=("parallel",),
            vmem_limit_bytes=VMEM_LIMIT_BYTES),
    )(x)
    return out[:T] if Tp != T else out


# ----------------------------------------------------------------------------
# Parameter init (deterministic, PyTorch-style uniform(-1/sqrt(H), 1/sqrt(H)),
# gate order (i, f, g, o) exactly like nn.LSTM).
# ----------------------------------------------------------------------------
def init_params(key, vocab_size, embedding_dim, hidden_size, num_layers,
                bidirectional):
    num_dirs = 2 if bidirectional else 1
    k_emb, k_lstm, k_lin = jax.random.split(key, 3)

    params = {}
    params["embedding"] = jax.random.normal(
        k_emb, (vocab_size, embedding_dim), jnp.float32)   # nn.Embedding: N(0,1)

    stdv = 1.0 / math.sqrt(hidden_size)
    lstm = []
    keys = jax.random.split(k_lstm, num_layers * num_dirs * 4)
    ki = 0
    for layer in range(num_layers):
        in_size = embedding_dim if layer == 0 else hidden_size * num_dirs
        dirs = []
        for _ in range(num_dirs):
            wih = jax.random.uniform(
                keys[ki], (in_size, 4 * hidden_size), jnp.float32, -stdv, stdv)
            whh = jax.random.uniform(
                keys[ki + 1], (hidden_size, 4 * hidden_size), jnp.float32, -stdv, stdv)
            b_ih = jax.random.uniform(
                keys[ki + 2], (4 * hidden_size,), jnp.float32, -stdv, stdv)
            b_hh = jax.random.uniform(
                keys[ki + 3], (4 * hidden_size,), jnp.float32, -stdv, stdv)
            ki += 4
            dirs.append({"wih": wih, "whh": whh, "bias": b_ih + b_hh})
        lstm.append(dirs)
    params["lstm"] = lstm

    feat = hidden_size * num_dirs
    stdv_lin = 1.0 / math.sqrt(feat)
    k_w, k_b = jax.random.split(k_lin)
    params["lin_w"] = jax.random.uniform(
        k_w, (feat, vocab_size), jnp.float32, -stdv_lin, stdv_lin)
    params["lin_b"] = jax.random.uniform(
        k_b, (vocab_size,), jnp.float32, -stdv_lin, stdv_lin)
    return params


def _permute_gates(w, H):
    """Reorder gate blocks (i, f, g, o) -> (i, f, o, g) along the last axis."""
    i, f, g, o = jnp.split(w, 4, axis=-1)
    return jnp.concatenate([i, f, o, g], axis=-1)


# ----------------------------------------------------------------------------
# Full forward pass (Pallas)
# ----------------------------------------------------------------------------
def lstm_denoiser_forward(params, x_idx, *, training=False):
    """x_idx: (T, B) int32 token indices -> (T, B, vocab) float32."""
    T, B = x_idx.shape
    # TODO(synk): at production embedding widths, fuse this gather into the
    # first input-projection kernel via PrefetchScalarGridSpec + pl.Element.
    h = jnp.take(params["embedding"], x_idx, axis=0)            # (T, B, E)

    for dirs in params["lstm"]:
        D = len(dirs)
        H = dirs[0]["whh"].shape[0]
        In = h.shape[-1]
        # Gate-permute and concat directions so both share one hoisted,
        # tiled input-projection matmul (one-time weight-prep glue).
        wih_cat = jnp.concatenate(
            [_permute_gates(p["wih"], H) for p in dirs], axis=1)     # (In, D*4H)
        bias_cat = jnp.concatenate(
            [_permute_gates(p["bias"], H) for p in dirs], axis=0)    # (D*4H,)
        whh_stack = jnp.stack(
            [_permute_gates(p["whh"], H) for p in dirs], axis=0)     # (D, H, 4H)

        # Hoisted input projection for all T*B rows at once (tiled, pipelined).
        x2 = h.reshape(T * B, In)
        xp2 = matmul_bias_pallas(x2, wih_cat, bias_cat)              # (T*B, D*4H)
        xp = xp2.reshape(T, B, D * 4 * H)

        # Sequential part: only h @ W_hh per step, both directions fused.
        out = bilstm_layer_pallas(xp, whh_stack)                     # (D, T, B, H)
        # TODO(synk): at production sizes, skip this concat by folding the two
        # per-direction slabs directly into the next layer's input projection.
        h = (jnp.concatenate([out[0], out[1]], axis=-1)
             if D == 2 else out[0])                                  # (T, B, D*H)

    F = h.shape[-1]
    V = params["lin_w"].shape[1]
    # Pad vocab (lane) dim to 128 so head + log_softmax stores are lane-dense.
    Vpad = _round_up(V, 128)
    lin_w = jnp.pad(params["lin_w"], ((0, 0), (0, Vpad - V)))
    lin_b = jnp.pad(params["lin_b"], (0, Vpad - V))

    logits2 = matmul_bias_pallas(h.reshape(T * B, F), lin_w, lin_b)  # (T*B, Vpad)
    logits = logits2.reshape(T, B, Vpad)
    if training:
        return logits[..., :V]
    out = logsoftmax_batch_pallas(logits)       # log_softmax over dim=1 (batch)
    return out[..., :V]


# ----------------------------------------------------------------------------
# Pure-JAX reference (for correctness check)
# ----------------------------------------------------------------------------
def _lstm_layer_ref(x, wih, whh, bias):
    T, B, _ = x.shape
    H = whh.shape[0]

    def step(carry, x_t):
        h, c = carry
        gates = x_t @ wih + h @ whh + bias
        i = jax.nn.sigmoid(gates[:, :H])
        f = jax.nn.sigmoid(gates[:, H:2 * H])
        g = jnp.tanh(gates[:, 2 * H:3 * H])
        o = jax.nn.sigmoid(gates[:, 3 * H:])
        c = f * c + i * g
        h = o * jnp.tanh(c)
        return (h, c), h

    init = (jnp.zeros((B, H), jnp.float32), jnp.zeros((B, H), jnp.float32))
    _, hs = jax.lax.scan(step, init, x)
    return hs


def lstm_denoiser_ref(params, x_idx, *, training=False):
    h = jnp.take(params["embedding"], x_idx, axis=0)
    for dirs in params["lstm"]:
        outs = []
        for d, p in enumerate(dirs):
            if d == 0:
                outs.append(_lstm_layer_ref(h, p["wih"], p["whh"], p["bias"]))
            else:
                o = _lstm_layer_ref(jnp.flip(h, axis=0), p["wih"], p["whh"], p["bias"])
                outs.append(jnp.flip(o, axis=0))
        h = jnp.concatenate(outs, axis=-1) if len(outs) > 1 else outs[0]
    logits = h @ params["lin_w"] + params["lin_b"]
    if training:
        return logits
    return jax.nn.log_softmax(logits, axis=1)  # dim=1 == batch axis, as in PyTorch code


# ----------------------------------------------------------------------------
# Main
# ----------------------------------------------------------------------------
if __name__ == "__main__":
    vocab_size = 16
    embedding_dim = 8
    hidden_size = 32
    num_layers = 2
    bidirectional = True
    T, B = 8, 2  # (seq_len, batch) — nn.LSTM default batch_first=False

    key = jax.random.PRNGKey(0)
    k_params, k_x = jax.random.split(key)
    params = init_params(k_params, vocab_size, embedding_dim, hidden_size,
                         num_layers, bidirectional)
    x_idx = jax.random.randint(k_x, (T, B), 0, vocab_size, dtype=jnp.int32)

    out = lstm_denoiser_forward(params, x_idx, training=False)  # eval path
    out = jax.block_until_ready(out)

    ref = jax.block_until_ready(lstm_denoiser_ref(params, x_idx, training=False))
    assert out.shape == (T, B, vocab_size)
    assert jnp.allclose(out, ref, atol=1e-3, rtol=1e-3), "Pallas output mismatch"

    print("KERNEL_OK")
</pallas_src>

<mosaic_0001>
module attributes {stable_mosaic.version = 11 : i64} {
  func.func @_matmul_bias_kernel(%arg0: i32, %arg1: i32, %arg2: i32, %arg3: memref<16x8xf32, #tpu.memory_space<vmem>>, %arg4: memref<8x256xf32, #tpu.memory_space<vmem>>, %arg5: memref<1x256xf32, #tpu.memory_space<vmem>>, %arg6: memref<16x256xf32, #tpu.memory_space<vmem>>, %arg7: memref<16x256xf32, #tpu.memory_space<vmem>>) attributes {dimension_semantics = [#tpu.dimension_semantics<parallel>, #tpu.dimension_semantics<parallel>, #tpu.dimension_semantics<arbitrary>], iteration_bounds = array<i64: 1, 1, 1>, scalar_prefetch = 0 : i64, scratch_operands = 1 : i64, tpu.core_type = #tpu.core_type<tc>, window_params = [{transform_indices = @transform_0, window_bounds = array<i64: 16, 8>}, {transform_indices = @transform_1, window_bounds = array<i64: 8, 256>}, {transform_indices = @transform_2, window_bounds = array<i64: 1, 256>}, {transform_indices = @transform_3, window_bounds = array<i64: 16, 256>}]} {
    %c0_i32 = arith.constant 0 : i32
    %0 = arith.cmpi eq, %arg2, %c0_i32 : i32
    %1 = arith.extui %0 : i1 to i32
    %c0_i32_0 = arith.constant 0 : i32
    %2 = arith.cmpi ne, %1, %c0_i32_0 : i32
    scf.if %2 {
      %c0_10 = arith.constant 0 : index
      %c0_11 = arith.constant 0 : index
      %12 = vector.load %arg5[%c0_10, %c0_11] : memref<1x256xf32, #tpu.memory_space<vmem>>, vector<1x256xf32>
      %13 = vector.shape_cast %12 : vector<1x256xf32> to vector<1x256xf32>
      %14 = vector.broadcast %13 : vector<1x256xf32> to vector<16x256xf32>
      %c0_12 = arith.constant 0 : index
      %c0_13 = arith.constant 0 : index
      %15 = vector.load %arg7[%c0_12, %c0_13] : memref<16x256xf32, #tpu.memory_space<vmem>>, vector<16x256xf32>
      tpu.vector_store %arg7[%c0_12, %c0_13], %14 {strides = array<i32>} : memref<16x256xf32, #tpu.memory_space<vmem>>, vector<16x256xf32>,
    } else {
    }
    %c0 = arith.constant 0 : index
    %c0_1 = arith.constant 0 : index
    %3 = vector.load %arg7[%c0, %c0_1] : memref<16x256xf32, #tpu.memory_space<vmem>>, vector<16x256xf32>
    %c0_2 = arith.constant 0 : index
    %c0_3 = arith.constant 0 : index
    %4 = vector.load %arg3[%c0_2, %c0_3] : memref<16x8xf32, #tpu.memory_space<vmem>>, vector<16x8xf32>
    %c0_4 = arith.constant 0 : index
    %c0_5 = arith.constant 0 : index
    %5 = vector.load %arg4[%c0_4, %c0_5] : memref<8x256xf32, #tpu.memory_space<vmem>>, vector<8x256xf32>
    %cst = arith.constant dense<0.000000e+00> : vector<16x256xf32>
    %6 = tpu.matmul %4, %5, %cst {dimension_numbers = #tpu.dot_dimension_numbers<[1], [0], [0], [1], [0, 0, 1, 1], [], []>} : vector<16x8xf32>, vector<8x256xf32>, vector<16x256xf32> -> vector<16x256xf32>
    %7 = arith.addf %3, %6 : vector<16x256xf32>
    %c0_6 = arith.constant 0 : index
    %c0_7 = arith.constant 0 : index
    %8 = vector.load %arg7[%c0_6, %c0_7] : memref<16x256xf32, #tpu.memory_space<vmem>>, vector<16x256xf32>
    tpu.vector_store %arg7[%c0_6, %c0_7], %7 {strides = array<i32>} : memref<16x256xf32, #tpu.memory_space<vmem>>, vector<16x256xf32>,
    %c0_i32_8 = arith.constant 0 : i32
    %9 = arith.cmpi eq, %arg2, %c0_i32_8 : i32
    %10 = arith.extui %9 : i1 to i32
    %c0_i32_9 = arith.constant 0 : i32
    %11 = arith.cmpi ne, %10, %c0_i32_9 : i32
    scf.if %11 {
      %c0_10 = arith.constant 0 : index
      %c0_11 = arith.constant 0 : index
      %12 = vector.load %arg7[%c0_10, %c0_11] : memref<16x256xf32, #tpu.memory_space<vmem>>, vector<16x256xf32>
      %c0_12 = arith.constant 0 : index
      %c0_13 = arith.constant 0 : index
      %13 = vector.load %arg6[%c0_12, %c0_13] : memref<16x256xf32, #tpu.memory_space<vmem>>, vector<16x256xf32>
      tpu.vector_store %arg6[%c0_12, %c0_13], %12 {strides = array<i32>} : memref<16x256xf32, #tpu.memory_space<vmem>>, vector<16x256xf32>,
    } else {
    }
    return
  }
  func.func @transform_0(%arg0: i32, %arg1: i32, %arg2: i32) -> (i32, i32) {
    %c0_i32 = arith.constant 0 : i32
    return %arg0, %arg2 : i32, i32
  }
  func.func @transform_1(%arg0: i32, %arg1: i32, %arg2: i32) -> (i32, i32) {
    %c0_i32 = arith.constant 0 : i32
    return %arg2, %arg1 : i32, i32
  }
  func.func @transform_2(%arg0: i32, %arg1: i32, %arg2: i32) -> (i32, i32) {
    %c0_i32 = arith.constant 0 : i32
    %c0_i32_0 = arith.constant 0 : i32
    return %c0_i32, %arg1 : i32, i32
  }
  func.func @transform_3(%arg0: i32, %arg1: i32, %arg2: i32) -> (i32, i32) {
    %c0_i32 = arith.constant 0 : i32
    return %arg0, %arg1 : i32, i32
  }
}

</mosaic_0001>

<bundles_post_ra>
// kernel: tpu_custom_call.1
= control target key start
LH: loop header
LB: loop body
LE: loop exit
PB: predicated region body
PF: predicated region fallthrough
CT: control target
= control target key end

     0   :  { %vm37_vm0 = vcmask 64512   ;;  %s203_s0 = inlined_call_operand.vmem [shape: f32[16,8], index: 0, kind: input, shape index: {}]   ;;  %s204_s1 = inlined_call_operand.vmem [shape: f32[8,256], index: 1, kind: input, shape index: {}]   ;;  %s205_s2 = inlined_call_operand.vmem [shape: f32[1,256], index: 2, kind: input, shape index: {}]   ;;  %s206_s3 = inlined_call_operand.hbm [shape: f32[16,256], index: 3, kind: output, shape index: {}]  }
   0x1   :  { %v35_v0 = vld [vmem:[%s204_s1] sm:$0xff]  ;;  %v36_v1 = vld [vmem:[%s204_s1 + $0x8] sm:$0xff] }
   0x2   :  { %v34_v2 = vld [vmem:[%s203_s0 + $0x8] sm:$0xff]  ;;  %131 = vmatpush.msra.mxu2 %v35_v0  ;;  %132 = vmatpush.msra.mxu3 %v36_v1  ;;  %v33_v3 = vld [vmem:[%s203_s0] sm:$0xff] }
   0x3   :  { %8 = vsyncpa [#allocation4], 0  ;;  %128 = vmatmul.msk.f32.vlgmr.msra.gmra.mxu2 %vm37_vm0, %v34_v2  ;;  %130 = vmatmul.msk.f32.vlgmr.msra.gmra.mxu3 %vm37_vm0, %v34_v2  ;;  %v19_v4 = vld [vmem:[%s205_s2] sm:$0x3]  ;;  %s162_s21 = smov [#allocation3]   ;;  %s115_s24 = sshll.u32 %s206_s3, 4  ;;  %s116_s24 = int_to_ptr.hbm [resolvable:$true] %s115_s24 }
   0x4   :  { %59 = vmatpush.msra.mxu0 %v35_v0  ;;  %82 = vmatpush.msra.mxu1 %v36_v1  ;;  %v21_v5 = vperm.slane %v19_v4, 0  ;;  %v22_v6 = vperm.slane %v19_v4, 1  ;;  %s113_s22 = sshll.u32 %s162_s21, 4  ;;  %s163_s2 = smov 256   ;;  %s114_s22 = int_to_ptr.vmem [resolvable:$true] %s113_s22 }
   0x5   :  { %127 = vmatmul.msk.f32.vlgmr.msra.gmra.mxu0 %vm37_vm0, %v33_v3  ;;  %129 = vmatmul.msk.f32.vlgmr.msra.gmra.mxu1 %vm37_vm0, %v33_v3  ;;  %s164_s25 = smov 16  }
  0x82   :  { %v61_v7 = vpop.f32.mrf.mxu0  ;;  %v84_v8 = vpop.f32.mrf.mxu1 }
  0x83   :  { %v90_v9 = vadd.f32 %v61_v7, %v21_v5  ;;  %v91_v10 = vadd.f32 %v84_v8, %v22_v6 }
  0x85   :  { %105 = vst [vmem:[#allocation3] sm:$0xff] %v90_v9 }
  0x86   :  { %v64_v11 = vpop.f32.mrf.mxu2  ;;  %106 = vst [vmem:[#allocation3 + $0x8] sm:$0xff] %v91_v10  ;;  %v87_v12 = vpop.f32.mrf.mxu3 }
  0x87   :  { %v92_v13 = vadd.f32 %v64_v11, %v21_v5  ;;  %v93_v14 = vadd.f32 %v87_v12, %v22_v6 }
  0x89   :  { %107 = vst [vmem:[#allocation3 + $0x10] sm:$0xff] %v92_v13 }
  0x8a   :  { %108 = vst [vmem:[#allocation3 + $0x18] sm:$0xff] %v93_v14 }
  0x8b   :  { %121 = dma.vmem_to_hbm [thread:$0]  %s114_s22, 512, %s116_s24, [#allocation4], %s163_s2, %s163_s2, %s164_s25  }
  0x8c   :  { %160 = dma.done.wait [#allocation4], 512  }
  0x8d   :  { %161 = vsyncadd [#allocation4], 4294966784 }
  0x8e   :  { %126 = vsyncpa [#allocation4], 1 }

</bundles_post_ra>
